<compile_context>
chip_gen: v6e
topology: v6e:2x2x1
jax: 0.10.0
libtpu: 0.0.40
codegen_flags: <defaults>
</compile_context>

<pallas_src>
import functools

import jax
import jax.numpy as jnp
from jax import lax
from jax.experimental import pallas as pl
from jax.experimental.pallas import tpu as pltpu

EPS = 1e-5  # nn.InstanceNorm2d default (affine=False, biased variance)


def _round_up(v, m):
    return (v + m - 1) // m * m


# --------------------------------------------------------------------------- #
# Kernels
# --------------------------------------------------------------------------- #
def _tb3_full_kernel(x_ref, w_ref, o_ref):
    """One whole sample per grid step: x (1, C_in, HW), w (C_in, C_out)."""
    x = x_ref[0]                                           # (C_in, HW) f32
    inv_n = 1.0 / x.shape[1]
    mean = jnp.sum(x, axis=1, keepdims=True) * inv_n
    ex2 = jnp.sum(x * x, axis=1, keepdims=True) * inv_n
    var = jnp.maximum(ex2 - mean * mean, 0.0)              # clamp f32 cancellation
    w = w_ref[...]
    # Fused normalize + ReLU + cast to MXU dtype (single live temporary).
    h = jnp.maximum((x - mean) * lax.rsqrt(var + EPS), 0.0).astype(w.dtype)
    # out[o, hw] = sum_i w[i, o] * h[i, hw] -> contract dim 0 of both operands.
    o_ref[0] = lax.dot_general(
        w, h,
        dimension_numbers=(((0,), (0,)), ((), ())),
        preferred_element_type=jnp.float32,
    ).astype(o_ref.dtype)


def _tb3_stats_kernel(x_ref, mean_ref, rstd_ref, sum_ref, sq_ref, *, hw, hw_tile):
    """Pass 1 (tiled path): accumulate per-channel sum / sum-of-squares over HW tiles."""
    j = pl.program_id(1)

    @pl.when(j == 0)
    def _():
        sum_ref[...] = jnp.zeros_like(sum_ref)
        sq_ref[...] = jnp.zeros_like(sq_ref)

    x = x_ref[0]                                           # (C_in, hw_tile) f32
    if hw % hw_tile != 0:
        # Tail tile: zero the out-of-range columns so they contribute nothing.
        col = j * hw_tile + lax.broadcasted_iota(jnp.int32, x.shape, 1)
        x = jnp.where(col < hw, x, 0.0)
    sum_ref[...] += jnp.sum(x, axis=1, keepdims=True)
    sq_ref[...] += jnp.sum(x * x, axis=1, keepdims=True)

    @pl.when(j == pl.num_programs(1) - 1)
    def _():
        inv_n = 1.0 / hw
        mean = sum_ref[...] * inv_n
        var = jnp.maximum(sq_ref[...] * inv_n - mean * mean, 0.0)
        mean_ref[0] = mean
        rstd_ref[0] = lax.rsqrt(var + EPS)


def _tb3_apply_kernel(x_ref, mean_ref, rstd_ref, w_ref, o_ref):
    """Pass 2 (tiled path): normalize + ReLU + 1x1 conv-transpose matmul per HW tile."""
    x = x_ref[0]                                           # (C_in, hw_tile) f32
    mean = mean_ref[0]                                     # (C_in, 1) f32
    rstd = rstd_ref[0]                                     # (C_in, 1) f32
    w = w_ref[...]                                         # (C_in, C_out)
    h = jnp.maximum((x - mean) * rstd, 0.0).astype(w.dtype)
    o_ref[0] = lax.dot_general(
        w, h,
        dimension_numbers=(((0,), (0,)), ((), ())),
        preferred_element_type=jnp.float32,
    ).astype(o_ref.dtype)


# --------------------------------------------------------------------------- #
# Wrapper
# --------------------------------------------------------------------------- #
def _vmem_budget_bytes():
    """Generation-aware scoped-VMEM budget (physical capacity minus headroom)."""
    cap = 64 << 20  # conservative fallback (v7x per-TC capacity)
    try:
        cap = int(getattr(pltpu.get_tpu_info(), "vmem_capacity_bytes", cap))
    except Exception:
        pass
    # v7x (64 MiB) -> 48 MiB; v5e/v6e (128 MiB) -> ~102 MiB.
    return max(16 << 20, min(cap - (16 << 20), int(cap * 0.8)))


def _full_block_need(C_in, C_out, HW, w_bytes):
    cin8, cout8, hw128 = _round_up(C_in, 8), _round_up(C_out, 8), _round_up(HW, 128)
    in_blk = cin8 * hw128 * 4
    out_blk = cout8 * hw128 * 4
    # double-buffered in/out blocks + weight + ~2.5 in-block temps + f32 acc.
    return 2 * (in_blk + out_blk) + w_bytes + 3 * in_blk + out_blk + (2 << 20)


def _pick_hw_tile(C_in, C_out, HW, w_bytes, budget):
    cin8, cout8 = _round_up(C_in, 8), _round_up(C_out, 8)
    # bytes per output lane column live in the apply pass:
    # 2x f32 x tile + 2x f32 out tile (double-buffered) + bf16 h + f32 matmul acc.
    per_col = 4 * (2 * cin8 + 2 * cout8) + 2 * cin8 + 4 * cout8
    avail = budget - w_bytes - (4 << 20)
    t = max(avail // max(per_col, 1), 128)
    t = min(t, 2048, _round_up(HW, 128))
    return int(t // 128 * 128)


def transition_block3(x_nchw, weight, *, matmul_dtype=jnp.bfloat16,
                      out_dtype=None, force_tiled=False, hw_tile=None):
    """x_nchw: (N, C_in, H, W); weight: (C_in, C_out, 1, 1) (ConvTranspose2d layout)."""
    N, C_in, H, W = x_nchw.shape
    assert weight.shape[0] == C_in and weight.shape[2:] == (1, 1)
    C_out = weight.shape[1]
    HW = H * W
    out_dtype = x_nchw.dtype if out_dtype is None else out_dtype

    x_flat = x_nchw.reshape(N, C_in, HW)                       # contiguous -> free view
    w2d = weight.reshape(C_in, C_out).astype(matmul_dtype)     # prepared once
    w_bytes = (_round_up(C_in, 16) * _round_up(C_out, 128)
               * jnp.dtype(matmul_dtype).itemsize)

    budget = _vmem_budget_bytes()
    full_need = _full_block_need(C_in, C_out, HW, w_bytes)
    use_tiled = force_tiled or full_need > budget

    if not use_tiled:
        # ---- full-sample path: single HBM pass over x -----------------------
        cost = pl.CostEstimate(
            flops=int(2 * N * C_in * C_out * HW + 6 * N * C_in * HW),
            transcendentals=int(N * C_in),
            bytes_accessed=int(4 * N * (C_in + C_out) * HW + w_bytes),
        )
        out_flat = pl.pallas_call(
            _tb3_full_kernel,
            out_shape=jax.ShapeDtypeStruct((N, C_out, HW), out_dtype),
            grid_spec=pltpu.PrefetchScalarGridSpec(
                num_scalar_prefetch=0,
                grid=(N,),
                in_specs=[
                    pl.BlockSpec((1, C_in, HW), lambda n: (n, 0, 0)),
                    pl.BlockSpec((C_in, C_out), lambda n: (0, 0)),
                ],
                out_specs=pl.BlockSpec((1, C_out, HW), lambda n: (n, 0, 0)),
            ),
            compiler_params=pltpu.CompilerParams(
                dimension_semantics=("parallel",),
                vmem_limit_bytes=int(min(max(full_need, 16 << 20), budget)),
            ),
            cost_estimate=cost,
        )(x_flat, w2d)
        return out_flat.reshape(N, C_out, H, W)

    # ---- tiled two-pass path (DenseNet-scale shapes / v7x 64 MiB VMEM) -------
    T = hw_tile if hw_tile is not None else _pick_hw_tile(C_in, C_out, HW, w_bytes, budget)
    assert T >= 128 and T % 128 == 0
    n_tiles = pl.cdiv(HW, T)

    stats_kernel = functools.partial(_tb3_stats_kernel, hw=HW, hw_tile=T)
    mean, rstd = pl.pallas_call(
        stats_kernel,
        out_shape=(jax.ShapeDtypeStruct((N, C_in, 1), jnp.float32),
                   jax.ShapeDtypeStruct((N, C_in, 1), jnp.float32)),
        grid_spec=pltpu.PrefetchScalarGridSpec(
            num_scalar_prefetch=0,
            grid=(N, n_tiles),
            in_specs=[pl.BlockSpec((1, C_in, T), lambda n, j: (n, 0, j))],
            out_specs=[pl.BlockSpec((1, C_in, 1), lambda n, j: (n, 0, 0)),
                       pl.BlockSpec((1, C_in, 1), lambda n, j: (n, 0, 0))],
            scratch_shapes=[pltpu.VMEM((C_in, 1), jnp.float32),
                            pltpu.VMEM((C_in, 1), jnp.float32)],
        ),
        compiler_params=pltpu.CompilerParams(
            dimension_semantics=("parallel", "arbitrary"),
            vmem_limit_bytes=int(budget),
        ),
        cost_estimate=pl.CostEstimate(
            flops=int(3 * N * C_in * HW),
            transcendentals=int(N * C_in),
            bytes_accessed=int(4 * N * C_in * HW),
        ),
    )(x_flat)

    out_flat = pl.pallas_call(
        _tb3_apply_kernel,
        out_shape=jax.ShapeDtypeStruct((N, C_out, HW), out_dtype),
        grid_spec=pltpu.PrefetchScalarGridSpec(
            num_scalar_prefetch=0,
            grid=(N, n_tiles),
            in_specs=[
                pl.BlockSpec((1, C_in, T), lambda n, j: (n, 0, j)),
                pl.BlockSpec((1, C_in, 1), lambda n, j: (n, 0, 0)),
                pl.BlockSpec((1, C_in, 1), lambda n, j: (n, 0, 0)),
                pl.BlockSpec((C_in, C_out), lambda n, j: (0, 0)),
            ],
            out_specs=pl.BlockSpec((1, C_out, T), lambda n, j: (n, 0, j)),
        ),
        compiler_params=pltpu.CompilerParams(
            dimension_semantics=("parallel", "parallel"),
            vmem_limit_bytes=int(budget),
        ),
        cost_estimate=pl.CostEstimate(
            flops=int(2 * N * C_in * C_out * HW + 3 * N * C_in * HW),
            transcendentals=0,
            bytes_accessed=int(4 * N * (C_in + C_out) * HW + w_bytes),
        ),
    )(x_flat, mean, rstd, w2d)

    return out_flat.reshape(N, C_out, H, W)


# --------------------------------------------------------------------------- #
# Reference + test
# --------------------------------------------------------------------------- #
def _reference(x_nchw, weight):
    mean = jnp.mean(x_nchw, axis=(2, 3), keepdims=True)
    var = jnp.mean((x_nchw - mean) ** 2, axis=(2, 3), keepdims=True)
    xn = (x_nchw - mean) / jnp.sqrt(var + EPS)
    h = jnp.maximum(xn, 0.0)
    w2d = weight.reshape(weight.shape[0], weight.shape[1])  # (C_in, C_out)
    return jnp.einsum("nihw,io->nohw", h, w2d)


# TODO(synk): F.dropout branch (droprate > 0) not implemented; module default dropRate=0.0.

if __name__ == "__main__":
    key = jax.random.PRNGKey(0)

    # (N, C_in, C_out, H, W, force_tiled, hw_tile)
    cases = [
        (2, 4, 8, 16, 16, False, None),    # aligned HW=256, full-block path
        (2, 6, 10, 14, 14, False, None),   # unaligned C/HW, full-block path, no padding
        (2, 8, 8, 16, 16, True, 128),      # tiled path, HW divisible by tile
        (1, 8, 4, 20, 24, True, 128),      # tiled path, partial tail tile (480 = 3*128 + 96)
    ]
    for idx, (N, C_in, C_out, H, W, force_tiled, hw_tile) in enumerate(cases):
        kx, kw, key = jax.random.split(key, 3)
        x = jax.random.normal(kx, (N, C_in, H, W), dtype=jnp.float32)
        # ConvTranspose2d weight layout: (in_planes, out_planes, 1, 1)
        weight = jax.random.normal(kw, (C_in, C_out, 1, 1), dtype=jnp.float32) * 0.1

        out = transition_block3(x, weight, force_tiled=force_tiled, hw_tile=hw_tile)
        out = jax.block_until_ready(out)

        ref = _reference(x, weight)
        assert out.shape == (N, C_out, H, W), (idx, out.shape)
        err = float(jnp.max(jnp.abs(out - ref)))
        # bf16 MXU operands (stats stay f32) -> slightly looser tolerance than pure f32.
        assert jnp.allclose(out, ref, atol=3e-2, rtol=3e-2), (idx, err)

    print("KERNEL_OK")
</pallas_src>

<mosaic_0001>
module attributes {stable_mosaic.version = 11 : i64} {
  func.func @_tb3_full_kernel(%arg0: i32, %arg1: memref<1x4x256xf32, #tpu.memory_space<vmem>>, %arg2: memref<4x8xbf16, #tpu.memory_space<vmem>>, %arg3: memref<1x8x256xf32, #tpu.memory_space<vmem>>) attributes {dimension_semantics = [#tpu.dimension_semantics<parallel>], iteration_bounds = array<i64: 2>, scalar_prefetch = 0 : i64, scratch_operands = 0 : i64, tpu.core_type = #tpu.core_type<tc>, window_params = [{transform_indices = @transform_0, window_bounds = array<i64: 1, 4, 256>}, {pipeline_mode = #tpu.pipeline_mode<synchronous>, transform_indices = @transform_1, window_bounds = array<i64: 4, 8>}, {transform_indices = @transform_2, window_bounds = array<i64: 1, 8, 256>}]} {
    %c0 = arith.constant 0 : index
    %c0_0 = arith.constant 0 : index
    %c0_1 = arith.constant 0 : index
    %0 = vector.load %arg1[%c0, %c0_0, %c0_1] : memref<1x4x256xf32, #tpu.memory_space<vmem>>, vector<1x4x256xf32>
    %1 = vector.shape_cast %0 : vector<1x4x256xf32> to vector<4x256xf32>
    %cst = arith.constant dense<0.000000e+00> : vector<4xf32>
    %2 = vector.multi_reduction <add>, %1, %cst [1] : vector<4x256xf32> to vector<4xf32>
    %3 = vector.shape_cast %2 : vector<4xf32> to vector<4x1xf32>
    %cst_2 = arith.constant 3.906250e-03 : f32
    %4 = vector.broadcast %cst_2 : f32 to vector<4x1xf32>
    %5 = arith.mulf %3, %4 : vector<4x1xf32>
    %6 = arith.mulf %1, %1 : vector<4x256xf32>
    %cst_3 = arith.constant dense<0.000000e+00> : vector<4xf32>
    %7 = vector.multi_reduction <add>, %6, %cst_3 [1] : vector<4x256xf32> to vector<4xf32>
    %8 = vector.shape_cast %7 : vector<4xf32> to vector<4x1xf32>
    %cst_4 = arith.constant 3.906250e-03 : f32
    %9 = vector.broadcast %cst_4 : f32 to vector<4x1xf32>
    %10 = arith.mulf %8, %9 : vector<4x1xf32>
    %11 = arith.mulf %5, %5 : vector<4x1xf32>
    %12 = arith.subf %10, %11 : vector<4x1xf32>
    %cst_5 = arith.constant 0.000000e+00 : f32
    %13 = vector.broadcast %cst_5 : f32 to vector<4x1xf32>
    %14 = arith.maximumf %12, %13 : vector<4x1xf32>
    %c0_6 = arith.constant 0 : index
    %c0_7 = arith.constant 0 : index
    %15 = vector.load %arg2[%c0_6, %c0_7] : memref<4x8xbf16, #tpu.memory_space<vmem>>, vector<4x8xbf16>
    %16 = vector.broadcast %5 : vector<4x1xf32> to vector<4x256xf32>
    %17 = arith.subf %1, %16 : vector<4x256xf32>
    %cst_8 = arith.constant 9.99999974E-6 : f32
    %18 = vector.broadcast %cst_8 : f32 to vector<4x1xf32>
    %19 = arith.addf %14, %18 : vector<4x1xf32>
    %20 = math.rsqrt %19 : vector<4x1xf32>
    %21 = vector.broadcast %20 : vector<4x1xf32> to vector<4x256xf32>
    %22 = arith.mulf %17, %21 : vector<4x256xf32>
    %cst_9 = arith.constant 0.000000e+00 : f32
    %23 = vector.broadcast %cst_9 : f32 to vector<4x256xf32>
    %24 = arith.maximumf %22, %23 : vector<4x256xf32>
    %25 = arith.truncf %24 : vector<4x256xf32> to vector<4x256xbf16>
    %cst_10 = arith.constant dense<0.000000e+00> : vector<8x256xf32>
    %26 = tpu.matmul %15, %25, %cst_10 {dimension_numbers = #tpu.dot_dimension_numbers<[0], [0], [1], [1], [0, 1, 1, 1], [], []>} : vector<4x8xbf16>, vector<4x256xbf16>, vector<8x256xf32> -> vector<8x256xf32>
    %c0_11 = arith.constant 0 : index
    %c0_12 = arith.constant 0 : index
    %c0_13 = arith.constant 0 : index
    %27 = vector.load %arg3[%c0_11, %c0_12, %c0_13] : memref<1x8x256xf32, #tpu.memory_space<vmem>>, vector<1x8x256xf32>
    %28 = vector.shape_cast %27 : vector<1x8x256xf32> to vector<8x256xf32>
    %29 = vector.shape_cast %26 : vector<8x256xf32> to vector<1x8x256xf32>
    tpu.vector_store %arg3[%c0_11, %c0_12, %c0_13], %29 {strides = array<i32>} : memref<1x8x256xf32, #tpu.memory_space<vmem>>, vector<1x8x256xf32>,
    return
  }
  func.func @transform_0(%arg0: i32) -> (i32, i32, i32) {
    %c0_i32 = arith.constant 0 : i32
    %c0_i32_0 = arith.constant 0 : i32
    %c0_i32_1 = arith.constant 0 : i32
    return %arg0, %c0_i32, %c0_i32_0 : i32, i32, i32
  }
  func.func @transform_1(%arg0: i32) -> (i32, i32) {
    %c0_i32 = arith.constant 0 : i32
    %c0_i32_0 = arith.constant 0 : i32
    %c0_i32_1 = arith.constant 0 : i32
    return %c0_i32, %c0_i32_0 : i32, i32
  }
  func.func @transform_2(%arg0: i32) -> (i32, i32, i32) {
    %c0_i32 = arith.constant 0 : i32
    %c0_i32_0 = arith.constant 0 : i32
    %c0_i32_1 = arith.constant 0 : i32
    return %arg0, %c0_i32, %c0_i32_0 : i32, i32, i32
  }
}

</mosaic_0001>

<bundles_post_ra>
// kernel: tpu_custom_call.1
= control target key start
LH: loop header
LB: loop body
LE: loop exit
PB: predicated region body
PF: predicated region fallthrough
CT: control target
= control target key end

     0   :  { %7 = vsyncpa [#allocation3], 0  ;;  %s797_s0 = inlined_call_operand.hbm [shape: f32[2,4,256], index: 0, kind: input, shape index: {}]   ;;  %s798_s1 = inlined_call_operand.hbm [shape: bf16[4,8], index: 1, kind: input, shape index: {}]   ;;  %s799_s2 = inlined_call_operand.hbm [shape: f32[2,8,256], index: 2, kind: output, shape index: {}]  }
   0x1   :  { %9 = vsyncpa [#allocation3 + $0x1], 0 }
   0x2   :  { %10 = vsyncpa [#allocation6], 0 }
   0x3   :  { %11 = vsyncpa [#allocation4], 0 }
   0x4   :  { %13 = vsyncpa [#allocation4 + $0x1], 0  ;;  %s618_s9 = smov 0   ;;  %s620_s10 = smov 0  }
   0x5   :  { %s622_s11 = smov 0   ;;  %s624_s12 = smov 0  }
   0x6 LB: > { %s639_s13 = sadd.s32 4294967295, %s596_s12   ;;  %s392_s14 = sadd.s32 4294967294, %s596_s12   ;;  %s596_s12 = sphi %s624_s12, %s822_s12   ;;  %s592_s11 = sphi %s622_s11, %s821_s11   ;;  %s588_s10 = sphi %s620_s10, %s820_s10   ;;  %s584_s9 = sphi %s618_s9, %s819_s9  }
   0x7   : > { %p39_p0 = scmp.ne.s32.totalorder %s588_s10, %s584_s9  ;;  %p800_p1 = scmp.eq.s32.totalorder %s639_s13, 0 }
   0x8   : > { %p90_p3 = scmp.eq.s32.totalorder %s392_s14, 1  ;;  %p393_p5 = scmp.ge.s32.totalorder %s596_s12, 1 }
   0x9   : > { %p648_p4 = por %p800_p1, %p39_p0  ;;  %p97_p7 = scmp.lt.s32.totalorder %s596_s12, 3 }
   0xa   : > { %p653_p6 = por %p90_p3, %p39_p0  ;;  %s598_s18 = smov [#allocation5]  }
   0xb   : > { %s804_s15 = scalar_select %p648_p4, 1, 0 }
   0xc   : > { %s805_s16 = scalar_select %p653_p6, 1, 0 }
   0xd   : > { %p658_p8 = pnand %p393_p5, %p97_p7  ;;  %s110_s19 = sshll.u32 %s598_s18, 4  ;;  %s111_s19 = int_to_ptr.vmem [resolvable:$true] %s110_s19 }
   0xe   : > { %s666_s20 = sadd.s32 1, %s596_s12   ;;  %s26_s24 = sadd.s32 1, %s592_s11 }
   0xf   : > { %s806_s17 = scalar_select %p658_p8, 1, 0 }
  0x10   : > { %p420_p10 = pneg %p658_p8  ;;  %s23_s22 = ssub.s32 %s596_s12, %s666_s20 }
  0x11   : > { %p676_p12 = scmp.eq.s32.totalorder %s23_s22, 0  ;;  %p33_p13 = scmp.ne.s32.totalorder %s592_s11, %s588_s10 }
  0x12   : > { %p670_p11 = pnand %p420_p10, %p800_p1  ;;  %s485_s25 = scalar_lea.vmem %s111_s19, 32 }
  0x13   : > { %p486_p3 = scmp.ne.s32.totalorder %s111_s19, %s485_s25  ;;  %p493_p9 = scmp.lt.s32.totalorder %s111_s19, %s111_s19 }
  0x14   : > { %p476_p0 = pneg %p670_p11  ;;  %p494_p2 = scmp.lt.s32.totalorder %s485_s25, %s485_s25 }
  0x16   : > { %p488_p5 = pnand %p486_p3, %p476_p0  ;;  %p495_p10 = por %p494_p2, %p493_p9 }
  0x18   : > { %p489_p7 = pneg %p488_p5 }
  0x1a   : > { %p496_p1 = pnand %p495_p10, %p489_p7 }
  0x1c   : > { %499 = shalt.err (!%p496_p1)
}
  0x1d   : > { %423 = dma.hbm_to_vmem [thread:$0]  (!%p670_p11), %s798_s1, 32, %s111_s19, [#allocation6]  }
  0x1e   : > { %s693_s28 = scalar_select %p676_p12, %s592_s11, %s26_s24  }
  0x1f   : > { %p34_p1 = scmp.eq.s32.totalorder %s596_s12, 0  ;;  %p809_p2 = scmp.eq.s32.totalorder %s639_s13, 1 }
  0x20   : > { %p433_p0 = scmp.lt.s32.totalorder %s596_s12, 2  ;;  %s121_s30 = sand.u32 1, %s592_s11  }
  0x21   : > { %p701_p9 = por %p809_p2, %p33_p13  ;;  %p35_p3 = por %p34_p1, %p33_p13 }
  0x22   : > { %s396_s3 = sshll.u32 %s121_s30, 3  ;;  %s410_s4 = sshll.u32 %s596_s12, 7 }
  0x23   : > { %s810_s29 = scalar_select %p701_p9, 1, 0 }
  0x24   : > { %s714_s7 = scalar_lea.hbm %s797_s0, %s410_s4  ;;  %s125_s8 = scalar_lea.vmem [#allocation2], %s396_s3 }
  0x25   : > { %s133_s14 = sshll.u32 %s125_s8, 4  ;;  %p716_p11 = pnand %p433_p0, %p35_p3  ;;  %s134_s14 = int_to_ptr.vmem [resolvable:$true] %s133_s14 }
  0x26   : > { %s122_s19 = scalar_lea.sflag [#allocation3], %s121_s30  ;;  %s500_s21 = scalar_lea.hbm %s714_s7, 128 }
  0x27   : > { %p501_p12 = scmp.ne.s32.totalorder %s714_s7, %s500_s21  ;;  %p502_p13 = pneg %p716_p11 }
  0x28   : > { %s505_s24 = scalar_lea.hbm %s797_s0, 256  ;;  %p506_p10 = scmp.lt.s32.totalorder %s714_s7, %s797_s0 }
  0x29   : > { %p503_p5 = pnand %p502_p13, %p501_p12  ;;  %p507_p1 = scmp.lt.s32.totalorder %s505_s24, %s500_s21 }
  0x2b   : > { %p504_p7 = pneg %p503_p5  ;;  %p508_p2 = por %p507_p1, %p506_p10 }
  0x2d   : > { %p509_p0 = pnand %p508_p2, %p504_p7 }
  0x2f   : > { %512 = shalt.err (!%p509_p0)
}
  0x30   : > { %s513_s27 = scalar_lea.vmem %s134_s14, 128  ;;  %s599_s30 = smov [#allocation2]  }
  0x31   : > { %p514_p3 = scmp.ne.s32.totalorder %s134_s14, %s513_s27  ;;  %s518_s3 = sshll.u32 %s599_s30, 4  ;;  %s519_s3 = int_to_ptr.vmem [resolvable:$false] %s518_s3 }
  0x32   : > { %s520_s4 = scalar_lea.vmem %s519_s3, 256  ;;  %p521_p12 = scmp.lt.s32.totalorder %s134_s14, %s519_s3 }
  0x33   : > { %p516_p6 = pnand %p514_p3, %p502_p13  ;;  %p522_p5 = scmp.lt.s32.totalorder %s520_s4, %s513_s27 }
  0x35   : > { %p517_p9 = pneg %p516_p6  ;;  %p523_p4 = por %p522_p5, %p521_p12 }
  0x37   : > { %p524_p8 = pnand %p523_p4, %p517_p9 }
  0x39   : > { %527 = shalt.err (!%p524_p8)
}
  0x3a   : > { %427 = dma.hbm_to_vmem [thread:$0]  (!%p716_p11), %s714_s7, 128, %s134_s14, %s122_s19  }
  0x3b   : > { %p812_p7 = scmp.ne.s32.totalorder %s806_s17, 0 }
  0x3c   : > { %s737_s5 = sand.u32 (!%p812_p7), 1, %s588_s10   ;;  %p813_p6 = scmp.ne.s32.totalorder (!%p812_p7), %s804_s15, 0 }
  0x3d   : > { %142 = sbr.rel (%p812_p7) target bundleno = 463 (0x1cf), region = 28  ;;  %s400_s6 = sshll.u32 (!%p812_p7), %s737_s5, 3 }
  0x3e   : > { %s145_s8 = scalar_lea.sflag (!%p812_p7), [#allocation3], %s737_s5  ;;  %s148_s21 = scalar_lea.vmem (!%p812_p7), [#allocation2], %s400_s6 }
  0x42   : > { %571 = dma.done.wait (%p813_p6), %s145_s8, 128  }
  0x43   : > { %573 = vsyncadd (%p813_p6), %s145_s8, 4294967168  ;;  %p814_p4 = scmp.eq.s32.totalorder %s639_s13, 0 }
  0x45   : > { %575 = dma.done.wait (%p814_p4), [#allocation6], 32   ;;  %p815_p8 = pmov %p814_p4 }
  0x46   : > { %vm178_vm0 = vcmask 1043456   ;;  %v174_v0 = vld [vmem:[%s148_s21] sm:$0xff]  ;;  %v198_v1 = vld [vmem:[#allocation5] sm:$0x3]  ;;  %v600_v11 = vmov 0   ;;  %v203_v21 = vlaneseq  ;;  %vm247_vm1 = vcmask 1041408  }
  0x47   : > { %577 = vsyncadd (%p815_p8), [#allocation6], 4294967264  ;;  %v176_v2 = vcombine.high %v174_v0, %v174_v0  ;;  %v179_v3 = vsel %vm178_vm0, %v174_v0, 0.0  ;;  %v185_v4 = vmul.f32 %v174_v0, %v174_v0  ;;  %227 = vxpose.xlu1.c.b16.start.end [1/1] (short) (narrow) %v198_v1, 16  ;;  %286 = vmatprep.mubr.bf16.mxu0 %v600_v11  ;;  %v601_v19 = vmov 839922192  }
  0x48   : > { %v201_v20 = vunpack.c.l.s4 %v601_v19  ;;  %v204_v24 = vshrl.u32 %v203_v21, 7  ;;  %vm243_vm2 = vcmask 31744   ;;  %s402_s15 = sshll.u32 %s737_s5, 4  ;;  %s411_s14 = sshll.u32 %s639_s13, 8 }
  0x49   : > { %v180_v5 = vsel %vm178_vm0, %v176_v2, 0.0  ;;  %v187_v6 = vcombine.high %v185_v4, %v185_v4  ;;  %v189_v7 = vsel %vm178_vm0, %v185_v4, 0.0  ;;  %s172_s17 = scalar_lea.vmem [#allocation7], %s402_s15  ;;  %s756_s22 = scalar_lea.hbm %s799_s2, %s411_s14 }
  0x4a   : > { %v181_v8 = vadd.f32 %v180_v5, %v179_v3  ;;  %v202_v23 = vunpack.c.0.s8 %v201_v20  ;;  %s312_s7 = sshll.u32 %s172_s17, 4  ;;  %s298_s23 = scalar_lea.sflag [#allocation4], %s737_s5  ;;  %s751_s7 = int_to_ptr.vmem [resolvable:$true] %s312_s7 }
  0x4b   : > { %v190_v9 = vsel %vm178_vm0, %v187_v6, 0.0  ;;  %s528_s24 = scalar_lea.vmem %s751_s7, 256  ;;  %p816_p11 = scmp.ne.s32.totalorder %s810_s29, 0 }
  0x4c   : > { %182 = vadd.xlane.f32.xlu0 %v181_v8  ;;  %v191_v10 = vadd.f32 %v190_v9, %v189_v7  ;;  %v205_v25 = vsub.s32 %v202_v23, %v204_v24  ;;  %p529_p9 = scmp.ne.s32.totalorder %s751_s7, %s528_s24  ;;  %s602_s13 = smov [#allocation7]  }
  0x4d   : > { %s532_s25 = sshll.u32 %s602_s13, 4  ;;  %s533_s25 = int_to_ptr.vmem [resolvable:$false] %s532_s25 }
  0x4e   : > { %p530_p13 = pnand %p529_p9, %p816_p11  ;;  %s534_s26 = scalar_lea.vmem %s533_s25, 512 }
  0x4f   : > { %p535_p1 = scmp.lt.s32.totalorder %s751_s7, %s533_s25  ;;  %p536_p2 = scmp.lt.s32.totalorder %s534_s26, %s528_s24 }
  0x50   : > { %192 = vadd.xlane.f32.xlu0 %v191_v10  ;;  %p531_p10 = pneg %p530_p13 }
  0x51   : > { %p537_p0 = por %p536_p2, %p535_p1 }
  0x53   : > { %p538_p3 = pnand %p537_p0, %p531_p10 }
  0xa9   : > { %v235_v36 = vpop.trf.xlu1 }
  0xd5   : > { %v183_v12 = vpop.xlane.xlu0 %182 }
  0xd6   : > { %v184_v13 = vmul.f32 0.00390625, %v183_v12 }
  0xd8   : > { %v195_v15 = vmul.f32 %v184_v13, %v184_v13  ;;  %v206_v26 = vrot.slane %v184_v13, %v205_v25 }
  0xd9   : > { %v193_v14 = vpop.xlane.xlu0 %192 }
  0xda   : > { %v194_v16 = vmul.f32 0.00390625, %v193_v14  ;;  %v208_v28 = vsub.f32 %v174_v0, %v206_v26 }
  0xdc   : > { %v196_v17 = vsub.f32 %v194_v16, %v195_v15 }
  0xde   : > { %v197_v18 = vmax.f32 %v196_v17, 0.0 }
  0xe0   : > { %v209_v22 = vadd.f32 1e-05, %v197_v18 }
  0xe2   : > { %472 = vrsqrt.f32 %v209_v22 }
  0xef   : > { %v473_v27 = vpop.eup %472 }
  0xf0   : > { %v218_v29 = vrot.slane %v473_v27, %v205_v25 }
  0xf2   : > { %v220_v30 = vmul.f32 %v218_v29, %v208_v28 }
  0xf4   : > { %v221_v31 = vmax.f32 %v220_v30, 0.0 }
  0xf6   : > { %v223_v32 = vcombine.high %v221_v31, %v221_v31  ;;  %v225_v33 = vpack.c.bf16 %v221_v31, %v221_v31 }
  0xf8   : > { %v226_v34 = vpack.c.bf16 %v223_v32, %v223_v32  ;;  %v249_v35 = vsel %vm247_vm1, %v225_v33, 0 }
  0xfa   : > { %403 = vmatprep.subr.msk.bf16.mxu0 %vm247_vm1, %v226_v34 }
  0xfb   : > { %269 = vmatpush1.bf16.msra.mxu0 %v249_v35 }
  0xfe   : > { %404 = vmatmul.mubr.msk.bf16.vlgmr.msra.gmra.mxu0 %vm243_vm2, %v235_v36 }
 0x1be   : > { %v288_v37 = vpop.f32.mrf.mxu0 }
 0x1bf   : > { %295 = vst [vmem:[%s172_s17] sm:$0xff] %v288_v37 }
 0x1c0   : > { %v290_v38 = vpop.f32.mrf.mxu0 }
 0x1c1   : > { %296 = vst [vmem:[%s172_s17 + $0x8] sm:$0xff] %v290_v38 }
 0x1c2   : > { %v292_v39 = vpop.f32.mrf.mxu0 }
 0x1c3   : > { %541 = shalt.err (!%p538_p3)
}
 0x1c4   : > { %s542_s27 = scalar_lea.hbm %s756_s22, 256  ;;  %s546_s4 = scalar_lea.hbm %s799_s2, 512 }
 0x1c5   : > { %p543_p12 = scmp.ne.s32.totalorder %s756_s22, %s542_s27  ;;  %p547_p6 = scmp.lt.s32.totalorder %s756_s22, %s799_s2 }
 0x1c6   : > { %p548_p4 = scmp.lt.s32.totalorder %s546_s4, %s542_s27 }
 0x1c7   : > { %p544_p5 = pnand %p543_p12, %p816_p11 }
 0x1c8   : > { %p549_p8 = por %p548_p4, %p547_p6 }
 0x1c9   : > { %p545_p7 = pneg %p544_p5 }
 0x1cb   : > { %p550_p9 = pnand %p549_p8, %p545_p7 }
 0x1cd   : > { %553 = shalt.err (!%p550_p9)
}
 0x1ce   : > { %418 = dma.vmem_to_hbm [thread:$0]  (%p816_p11), %s751_s7, 256, %s756_s22, %s298_s23   ;;  %v293_v40 = vpop.f32.mrf.mxu0 }
 0x1cf PF: > { %s324_s8 = sand.u32 1, %s584_s9   ;;  %p817_p13 = scmp.ne.s32.totalorder %s805_s16, 0 }
 0x1d0   : > { %p818_p10 = scmp.ge.s32.totalorder %s596_s12, 2  ;;  %s325_s21 = scalar_lea.sflag [#allocation4], %s324_s8 }
 0x1d2   : > { %p429_p1 = pnand %p818_p10, %p817_p13 }
 0x1d4   : > { %p430_p2 = pneg %p429_p1 }
 0x1d6   : > { %579 = dma.done.wait (%p430_p2), %s325_s21, 256  }
 0x1d7   : > { %581 = vsyncadd (%p430_p2), %s325_s21, 4294967040  ;;  %p16_p0 = scmp.ge.s32.totalorder %s666_s20, 4   ;;  %s819_s9 = smov %s588_s10 }
 0x1d8   : > { %s820_s10 = smov %s592_s11  ;;  %s821_s11 = smov %s693_s28 }
 0x1d9   : > { %s822_s12 = smov %s666_s20  ;;  %18 = sbr.rel (!%p16_p0) target bundleno = 6 (0x6), region = 77 }
 0x1de   :  { %330 = vsyncpa [#allocation3], 1 }
 0x1df   :  { %332 = vsyncpa [#allocation3 + $0x1], 1 }
 0x1e0   :  { %333 = vsyncpa [#allocation6], 1 }
 0x1e1   :  { %334 = vsyncpa [#allocation4], 1 }
 0x1e2   :  { %336 = vsyncpa [#allocation4 + $0x1], 1 }

</bundles_post_ra>
